<compile_context>
chip_gen: v5e
topology: v5e:2x2
jax: 0.10.0
libtpu: 0.0.40
codegen_flags: <defaults>
</compile_context>

<pallas_src>
import jax
import jax.numpy as jnp
from jax.experimental import pallas as pl
from jax.experimental.pallas import tpu as pltpu


def _round_up(x, m):
    return ((x + m - 1) // m) * m


def _vmem_capacity_bytes():
    try:
        info = pltpu.get_tpu_info()
        cap = getattr(info, "vmem_capacity_bytes", None)
        if cap:
            return int(cap)
    except Exception:
        pass
    return 64 << 20  # conservative fallback: v7x per-core VMEM


# ---------------------------------------------------------------------------
# Pallas kernel: masked mean pooling (S-tiled reduction) -> bf16 linear head
#                -> L2 normalize
#   hidden_ref : (TB, TS, H)  bf16/f32 (streamed)
#   mask_ref   : (TB, TS)     int32/f32 (streamed)
#   w_ref      : (H, Dp)      bf16 (resident across grid steps)
#   out_ref    : (TB, Dp)     f32  (lane-dense, written at last S step)
#   acc_ref    : (TB, H)      f32  scratch (pooled-sum accumulator)
#   den_ref    : (TB, 1)      f32  scratch (mask-count accumulator)
# ---------------------------------------------------------------------------
def _encode_kernel(hidden_ref, mask_ref, w_ref, out_ref, acc_ref, den_ref):
    s = pl.program_id(1)

    @pl.when(s == 0)
    def _init():
        acc_ref[...] = jnp.zeros_like(acc_ref)
        den_ref[...] = jnp.zeros_like(den_ref)

    hidden = hidden_ref[...]                               # (TB, TS, H)
    maskf = mask_ref[...].astype(jnp.float32)              # (TB, TS) 0/1

    # mean_pooling numerator: masked multiply in the input dtype (exact for a
    # 0/1 mask), f32 accumulation over this sequence chunk only.
    masked = hidden * maskf[:, :, None].astype(hidden.dtype)
    acc_ref[...] += jnp.sum(masked, axis=1, dtype=jnp.float32)
    den_ref[...] += jnp.sum(maskf, axis=1, keepdims=True)

    @pl.when(s == pl.num_programs(1) - 1)
    def _finalize():
        # mean_pooling denominator: clamp(sum(mask), 1e-9); EUP reciprocal
        # (denom is an integer token count, approx error is irrelevant).
        denom = jnp.maximum(den_ref[...], 1e-9)
        pooled = acc_ref[...] * pl.reciprocal(denom, approx=True)   # (TB, H)

        # LinearHead(in, out, bias=False): bf16 MXU matmul, f32 accumulate.
        reps = jnp.dot(pooled.astype(w_ref.dtype), w_ref[...],
                       preferred_element_type=jnp.float32)          # (TB, Dp)

        # F.normalize(reps, dim=1): x / max(||x||_2, 1e-12)
        sumsq = jnp.sum(reps * reps, axis=1, keepdims=True)
        inv_norm = jax.lax.rsqrt(jnp.maximum(sumsq, 1e-24))
        out_ref[...] = (reps * inv_norm).astype(out_ref.dtype)


def _choose_tiles(B, S, H, Dp, h_bytes, budget_bytes):
    """Pick (batch_tile, seq_tile) that tile B and S exactly, satisfy the
    (8, 128) block rules without padding, and fit the VMEM budget."""

    def cost(tb, ts):
        hid = 2 * tb * ts * H * h_bytes            # hidden, double-buffered
        msk = 2 * tb * ts * 4                      # 32-bit mask, double-buffered
        out = 2 * tb * Dp * 4                      # f32 output block
        wgt = 2 * H * Dp * 2                       # resident bf16 weight (2 bufs)
        scr = tb * H * 4 + tb * 128 * 4            # scratch accumulators
        tmp = tb * ts * H * (h_bytes + 4)          # masked copy + f32 reduce temp
        tmp += tb * (H + 2 * Dp) * 4               # pooled / reps temporaries
        return hid + msk + out + wgt + scr + tmp

    tb_cands = sorted({B} | {t for t in range(8, B, 8) if B % t == 0}, reverse=True)
    ts_cands = sorted({S} | {t for t in range(128, S, 128) if S % t == 0}, reverse=True)

    best = None
    for ts in ts_cands:
        for tb in tb_cands:
            c = cost(tb, ts)
            if c <= budget_bytes:
                key = (tb * ts, ts)                # biggest block; prefer long TS
                if best is None or key > best[0]:
                    best = (key, (tb, ts, c))
    if best is not None:
        return best[1]
    # Nothing fits the preferred budget: smallest legal tile (caller raises the
    # VMEM limit accordingly).
    tb, ts = min(tb_cands), min(ts_cands)
    return tb, ts, cost(tb, ts)


def encode_reps(hidden, mask, weight):
    """Masked-mean pooling + linear head + L2 normalize (single pallas_call).

    hidden: (B, S, H) float (bf16 preferred — streamed from HBM as-is).
    mask:   (B, S)    0/1 attention mask (any numeric dtype).
    weight: (H, D)    LinearHead weight (no bias).
    returns (B, D) float32 L2-normalized reps.
    """
    B, S, H = hidden.shape
    Hw, D = weight.shape
    assert Hw == H

    # Lane-dense output: pad only the (tiny) head weight along D.  `hidden`
    # streams unpadded — block last dim == full H is legal per the (8,128) rule.
    Dp = _round_up(D, 128)
    w = weight.astype(jnp.bfloat16)
    if Dp != D:
        w = jnp.pad(w, ((0, 0), (0, Dp - D)))

    # Keep the mask in a 32-bit dtype so its blocks obey (8,128) tiling; cast
    # per-block in-kernel (no wrapper pass needed for int32/float32 masks).
    if jnp.dtype(mask.dtype).itemsize != 4:
        mask = mask.astype(jnp.float32)

    cap = _vmem_capacity_bytes()
    # ~48 MiB target on v7x (64 MiB physical), ~96 MiB on v5e/v6e (128 MiB).
    vmem_limit = min(cap * 3 // 4, 96 << 20)
    budget = vmem_limit * 7 // 10                  # headroom for pipeline bookkeeping
    h_bytes = jnp.dtype(hidden.dtype).itemsize
    TB, TS, est = _choose_tiles(B, S, H, Dp, h_bytes, budget)
    if est > budget:                               # fallback tile: raise the limit
        vmem_limit = max(vmem_limit, min(est + (8 << 20), cap))

    grid = (B // TB, S // TS)
    out = pl.pallas_call(
        _encode_kernel,
        out_shape=jax.ShapeDtypeStruct((B, Dp), jnp.float32),
        grid_spec=pltpu.PrefetchScalarGridSpec(
            num_scalar_prefetch=0,
            grid=grid,
            in_specs=[
                pl.BlockSpec((TB, TS, H), lambda b, s: (b, s, 0)),   # streamed
                pl.BlockSpec((TB, TS), lambda b, s: (b, s)),         # streamed
                # Resident bf16 weight.
                # TODO(synk): pipeline_mode=pl.Buffered(1) here once
                # single-buffering of constant-index inputs is supported.
                pl.BlockSpec((H, Dp), lambda b, s: (0, 0)),
            ],
            out_specs=pl.BlockSpec((TB, Dp), lambda b, s: (b, 0)),
            scratch_shapes=[
                pltpu.VMEM((TB, H), jnp.float32),    # pooled-sum accumulator
                pltpu.VMEM((TB, 1), jnp.float32),    # mask-count accumulator
            ],
        ),
        compiler_params=pltpu.CompilerParams(
            dimension_semantics=("parallel", "arbitrary"),   # megacore on batch
            vmem_limit_bytes=int(vmem_limit),
        ),
    )(hidden, mask, w)

    return out if Dp == D else out[:, :D]


# ---------------------------------------------------------------------------
# DRModelForInference (JAX wrapper)
# ---------------------------------------------------------------------------
class DRModelForInference:
    """Tied query/passage encoder for inference.

    forward(query, passage) -> {"q_reps", "p_reps"} matching DROutput.
    """

    def __init__(self, vocab_size=64, hidden_dim=32, proj_out_dim=32, seed=0):
        key = jax.random.PRNGKey(seed)
        k_emb, k_head = jax.random.split(key)
        # TODO(synk): the real HF transformer backbone (lm_q/lm_p) is external;
        # stubbed here as a deterministic bf16 embedding lookup producing
        # `last_hidden_state`.
        self.embedding = (
            jax.random.normal(k_emb, (vocab_size, hidden_dim), jnp.float32) * 0.1
        ).astype(jnp.bfloat16)
        # LinearHead (tied for q and p): weight [H, D], no bias
        self.head_w = (
            jax.random.normal(k_head, (hidden_dim, proj_out_dim), jnp.float32) * 0.1
        )

    def _backbone(self, input_ids):
        # plain-JAX glue: (B, S) int32 -> (B, S, H) bf16 "last_hidden_state"
        return self.embedding[input_ids]

    def encode(self, items):
        if items is None:
            return None, None
        hidden = self._backbone(items["input_ids"])                        # (B, S, H)
        reps = encode_reps(hidden, items["attention_mask"], self.head_w)   # (B, D)
        return hidden, reps

    def encode_query(self, qry):
        return self.encode(qry)

    def encode_passage(self, psg):
        return self.encode(psg)

    def forward(self, query=None, passage=None):
        # Two independent pallas_calls (tied weights): no wrapper-side
        # concat/pad passes over the hidden tensors.
        _, q_reps = self.encode_query(query)
        _, p_reps = self.encode_passage(passage)
        return {"q_reps": q_reps, "p_reps": p_reps}


# ---------------------------------------------------------------------------
# Pure-JAX reference (mirrors the kernel's dtype policy: f32 pooling, bf16
# head matmul with f32 accumulation) for the correctness check.
# ---------------------------------------------------------------------------
def _reference_reps(hidden, mask, weight):
    hidden = hidden.astype(jnp.float32)
    maskf = mask.astype(jnp.float32)
    summed = jnp.sum(hidden * maskf[:, :, None], axis=1)
    denom = jnp.maximum(jnp.sum(maskf, axis=1, keepdims=True), 1e-9)
    pooled = summed / denom
    reps = jnp.dot(pooled.astype(jnp.bfloat16), weight.astype(jnp.bfloat16),
                   preferred_element_type=jnp.float32)
    norm = jnp.sqrt(jnp.sum(reps * reps, axis=1, keepdims=True))
    return reps / jnp.maximum(norm, 1e-12)


if __name__ == "__main__":
    B_Q, B_P, S, H, D, VOCAB = 2, 4, 8, 32, 32, 64

    key = jax.random.PRNGKey(0)
    k1, k2, k3, k4 = jax.random.split(key, 4)

    query = {
        "input_ids": jax.random.randint(k1, (B_Q, S), 0, VOCAB, dtype=jnp.int32),
        "attention_mask": (jax.random.uniform(k2, (B_Q, S)) > 0.2).astype(jnp.int32),
    }
    passage = {
        "input_ids": jax.random.randint(k3, (B_P, S), 0, VOCAB, dtype=jnp.int32),
        "attention_mask": (jax.random.uniform(k4, (B_P, S)) > 0.2).astype(jnp.int32),
    }
    # ensure at least one valid token per row
    query["attention_mask"] = query["attention_mask"].at[:, 0].set(1)
    passage["attention_mask"] = passage["attention_mask"].at[:, 0].set(1)

    model = DRModelForInference(vocab_size=VOCAB, hidden_dim=H, proj_out_dim=D, seed=0)
    out = model.forward(query=query, passage=passage)
    q_reps = jax.block_until_ready(out["q_reps"])
    p_reps = jax.block_until_ready(out["p_reps"])

    # correctness check vs pure-JAX reference (same bf16 backbone output;
    # tolerance covers the EUP approx-reciprocal and f32 summation order)
    q_ref = _reference_reps(model._backbone(query["input_ids"]),
                            query["attention_mask"], model.head_w)
    p_ref = _reference_reps(model._backbone(passage["input_ids"]),
                            passage["attention_mask"], model.head_w)
    assert q_reps.shape == (B_Q, D) and p_reps.shape == (B_P, D)
    assert jnp.allclose(q_reps, q_ref, atol=2e-3, rtol=2e-3)
    assert jnp.allclose(p_reps, p_ref, atol=2e-3, rtol=2e-3)

    print("KERNEL_OK")
</pallas_src>

<mosaic_0001>
module attributes {stable_mosaic.version = 11 : i64} {
  func.func @_encode_kernel(%arg0: i32, %arg1: i32, %arg2: memref<2x8x32xbf16, #tpu.memory_space<vmem>>, %arg3: memref<2x8xi32, #tpu.memory_space<vmem>>, %arg4: memref<32x128xbf16, #tpu.memory_space<vmem>>, %arg5: memref<2x128xf32, #tpu.memory_space<vmem>>, %arg6: memref<2x32xf32, #tpu.memory_space<vmem>>, %arg7: memref<2x1xf32, #tpu.memory_space<vmem>>) attributes {dimension_semantics = [#tpu.dimension_semantics<parallel>, #tpu.dimension_semantics<arbitrary>], iteration_bounds = array<i64: 1, 1>, scalar_prefetch = 0 : i64, scratch_operands = 2 : i64, tpu.core_type = #tpu.core_type<tc>, window_params = [{transform_indices = @transform_0, window_bounds = array<i64: 2, 8, 32>}, {transform_indices = @transform_1, window_bounds = array<i64: 2, 8>}, {pipeline_mode = #tpu.pipeline_mode<synchronous>, transform_indices = @transform_2, window_bounds = array<i64: 32, 128>}, {transform_indices = @transform_3, window_bounds = array<i64: 2, 128>}]} {
    %c0_i32 = arith.constant 0 : i32
    %0 = arith.cmpi eq, %arg1, %c0_i32 : i32
    %1 = arith.extui %0 : i1 to i32
    %c0_i32_0 = arith.constant 0 : i32
    %2 = arith.cmpi ne, %1, %c0_i32_0 : i32
    scf.if %2 {
      %cst_16 = arith.constant 0.000000e+00 : f32
      %23 = vector.broadcast %cst_16 : f32 to vector<2x32xf32>
      %c0_17 = arith.constant 0 : index
      %c0_18 = arith.constant 0 : index
      %24 = vector.load %arg6[%c0_17, %c0_18] : memref<2x32xf32, #tpu.memory_space<vmem>>, vector<2x32xf32>
      tpu.vector_store %arg6[%c0_17, %c0_18], %23 {strides = array<i32>} : memref<2x32xf32, #tpu.memory_space<vmem>>, vector<2x32xf32>,
      %cst_19 = arith.constant 0.000000e+00 : f32
      %25 = vector.broadcast %cst_19 : f32 to vector<2x1xf32>
      %c0_20 = arith.constant 0 : index
      %c0_21 = arith.constant 0 : index
      %26 = vector.load %arg7[%c0_20, %c0_21] : memref<2x1xf32, #tpu.memory_space<vmem>>, vector<2x1xf32>
      tpu.vector_store %arg7[%c0_20, %c0_21], %25 {strides = array<i32>} : memref<2x1xf32, #tpu.memory_space<vmem>>, vector<2x1xf32>,
    } else {
    }
    %c0 = arith.constant 0 : index
    %c0_1 = arith.constant 0 : index
    %c0_2 = arith.constant 0 : index
    %3 = vector.load %arg2[%c0, %c0_1, %c0_2] : memref<2x8x32xbf16, #tpu.memory_space<vmem>>, vector<2x8x32xbf16>
    %c0_3 = arith.constant 0 : index
    %c0_4 = arith.constant 0 : index
    %4 = vector.load %arg3[%c0_3, %c0_4] : memref<2x8xi32, #tpu.memory_space<vmem>>, vector<2x8xi32>
    %5 = arith.sitofp %4 : vector<2x8xi32> to vector<2x8xf32>
    %6 = vector.shape_cast %5 : vector<2x8xf32> to vector<2x8x1xf32>
    %7 = arith.truncf %6 : vector<2x8x1xf32> to vector<2x8x1xbf16>
    %8 = vector.broadcast %7 : vector<2x8x1xbf16> to vector<2x8x32xbf16>
    %9 = arith.mulf %3, %8 : vector<2x8x32xbf16>
    %c0_5 = arith.constant 0 : index
    %c0_6 = arith.constant 0 : index
    %10 = vector.load %arg6[%c0_5, %c0_6] : memref<2x32xf32, #tpu.memory_space<vmem>>, vector<2x32xf32>
    %11 = arith.extf %9 : vector<2x8x32xbf16> to vector<2x8x32xf32>
    %cst = arith.constant dense<0.000000e+00> : vector<2x32xf32>
    %12 = vector.multi_reduction <add>, %11, %cst [1] : vector<2x8x32xf32> to vector<2x32xf32>
    %13 = arith.addf %10, %12 : vector<2x32xf32>
    %c0_7 = arith.constant 0 : index
    %c0_8 = arith.constant 0 : index
    %14 = vector.load %arg6[%c0_7, %c0_8] : memref<2x32xf32, #tpu.memory_space<vmem>>, vector<2x32xf32>
    tpu.vector_store %arg6[%c0_7, %c0_8], %13 {strides = array<i32>} : memref<2x32xf32, #tpu.memory_space<vmem>>, vector<2x32xf32>,
    %c0_9 = arith.constant 0 : index
    %c0_10 = arith.constant 0 : index
    %15 = vector.load %arg7[%c0_9, %c0_10] : memref<2x1xf32, #tpu.memory_space<vmem>>, vector<2x1xf32>
    %cst_11 = arith.constant dense<0.000000e+00> : vector<2xf32>
    %16 = vector.multi_reduction <add>, %5, %cst_11 [1] : vector<2x8xf32> to vector<2xf32>
    %17 = vector.shape_cast %16 : vector<2xf32> to vector<2x1xf32>
    %18 = arith.addf %15, %17 : vector<2x1xf32>
    %c0_12 = arith.constant 0 : index
    %c0_13 = arith.constant 0 : index
    %19 = vector.load %arg7[%c0_12, %c0_13] : memref<2x1xf32, #tpu.memory_space<vmem>>, vector<2x1xf32>
    tpu.vector_store %arg7[%c0_12, %c0_13], %18 {strides = array<i32>} : memref<2x1xf32, #tpu.memory_space<vmem>>, vector<2x1xf32>,
    %c0_i32_14 = arith.constant 0 : i32
    %20 = arith.cmpi eq, %arg1, %c0_i32_14 : i32
    %21 = arith.extui %20 : i1 to i32
    %c0_i32_15 = arith.constant 0 : i32
    %22 = arith.cmpi ne, %21, %c0_i32_15 : i32
    scf.if %22 {
      %c0_16 = arith.constant 0 : index
      %c0_17 = arith.constant 0 : index
      %23 = vector.load %arg7[%c0_16, %c0_17] : memref<2x1xf32, #tpu.memory_space<vmem>>, vector<2x1xf32>
      %cst_18 = arith.constant 9.99999971E-10 : f32
      %24 = vector.broadcast %cst_18 : f32 to vector<2x1xf32>
      %25 = arith.maximumf %23, %24 : vector<2x1xf32>
      %c0_19 = arith.constant 0 : index
      %c0_20 = arith.constant 0 : index
      %26 = vector.load %arg6[%c0_19, %c0_20] : memref<2x32xf32, #tpu.memory_space<vmem>>, vector<2x32xf32>
      %27 = tpu.reciprocal %25 {approx = true} : vector<2x1xf32> -> vector<2x1xf32>
      %28 = vector.broadcast %27 : vector<2x1xf32> to vector<2x32xf32>
      %29 = arith.mulf %26, %28 : vector<2x32xf32>
      %30 = arith.truncf %29 : vector<2x32xf32> to vector<2x32xbf16>
      %c0_21 = arith.constant 0 : index
      %c0_22 = arith.constant 0 : index
      %31 = vector.load %arg4[%c0_21, %c0_22] : memref<32x128xbf16, #tpu.memory_space<vmem>>, vector<32x128xbf16>
      %cst_23 = arith.constant dense<0.000000e+00> : vector<2x128xf32>
      %32 = tpu.matmul %30, %31, %cst_23 {dimension_numbers = #tpu.dot_dimension_numbers<[1], [0], [0], [1], [0, 0, 1, 1], [], []>} : vector<2x32xbf16>, vector<32x128xbf16>, vector<2x128xf32> -> vector<2x128xf32>
      %33 = arith.mulf %32, %32 : vector<2x128xf32>
      %cst_24 = arith.constant dense<0.000000e+00> : vector<2xf32>
      %34 = vector.multi_reduction <add>, %33, %cst_24 [1] : vector<2x128xf32> to vector<2xf32>
      %35 = vector.shape_cast %34 : vector<2xf32> to vector<2x1xf32>
      %cst_25 = arith.constant 1.000000e-24 : f32
      %36 = vector.broadcast %cst_25 : f32 to vector<2x1xf32>
      %37 = arith.maximumf %35, %36 : vector<2x1xf32>
      %38 = math.rsqrt %37 : vector<2x1xf32>
      %39 = vector.broadcast %38 : vector<2x1xf32> to vector<2x128xf32>
      %40 = arith.mulf %32, %39 : vector<2x128xf32>
      %c0_26 = arith.constant 0 : index
      %c0_27 = arith.constant 0 : index
      %41 = vector.load %arg5[%c0_26, %c0_27] : memref<2x128xf32, #tpu.memory_space<vmem>>, vector<2x128xf32>
      tpu.vector_store %arg5[%c0_26, %c0_27], %40 {strides = array<i32>} : memref<2x128xf32, #tpu.memory_space<vmem>>, vector<2x128xf32>,
    } else {
    }
    return
  }
  func.func @transform_0(%arg0: i32, %arg1: i32) -> (i32, i32, i32) {
    %c0_i32 = arith.constant 0 : i32
    %c0_i32_0 = arith.constant 0 : i32
    return %arg0, %arg1, %c0_i32 : i32, i32, i32
  }
  func.func @transform_1(%arg0: i32, %arg1: i32) -> (i32, i32) {
    %c0_i32 = arith.constant 0 : i32
    return %arg0, %arg1 : i32, i32
  }
  func.func @transform_2(%arg0: i32, %arg1: i32) -> (i32, i32) {
    %c0_i32 = arith.constant 0 : i32
    %c0_i32_0 = arith.constant 0 : i32
    %c0_i32_1 = arith.constant 0 : i32
    return %c0_i32, %c0_i32_0 : i32, i32
  }
  func.func @transform_3(%arg0: i32, %arg1: i32) -> (i32, i32) {
    %c0_i32 = arith.constant 0 : i32
    %c0_i32_0 = arith.constant 0 : i32
    return %arg0, %c0_i32 : i32, i32
  }
}

</mosaic_0001>

<bundles_post_ra>
// kernel: tpu_custom_call.1
= control target key start
LH: loop header
LB: loop body
LE: loop exit
PB: predicated region body
PF: predicated region fallthrough
CT: control target
= control target key end

     0   :  { %8 = vsyncpa [#allocation5], 0  ;;  %s397_s0 = inlined_call_operand.hbm [shape: bf16[2,8,32], index: 0, kind: input, shape index: {}]   ;;  %s398_s1 = inlined_call_operand.hbm [shape: s32[2,8], index: 1, kind: input, shape index: {}]   ;;  %s399_s2 = inlined_call_operand.hbm [shape: bf16[32,128], index: 2, kind: input, shape index: {}]   ;;  %s400_s3 = inlined_call_operand.hbm [shape: f32[2,128], index: 3, kind: output, shape index: {}]  }
   0x1   :  { %9 = vsyncpa [#allocation8], 0  ;;  %s29_s14 = sshll.u32 %s398_s1, 4  ;;  %s30_s14 = int_to_ptr.hbm [resolvable:$true] %s29_s14 }
   0x2   :  { %10 = vsyncpa [#allocation6], 0  ;;  %s350_s15 = smov [#allocation7]   ;;  %s15_s19 = sshll.u32 %s397_s0, 4  ;;  %s16_s19 = int_to_ptr.hbm [resolvable:$true] %s15_s19 }
   0x3   :  { %s31_s16 = sshll.u32 %s350_s15, 4  ;;  %s351_s20 = smov [#allocation4]   ;;  %s32_s16 = int_to_ptr.vmem [resolvable:$true] %s31_s16 }
   0x4   :  { %34 = dma.hbm_to_vmem [thread:$0]  %s30_s14, 32, %s32_s16, [#allocation8]  }
   0x5   :  { %s17_s21 = sshll.u32 %s351_s20, 4  ;;  %s352_s22 = smov 64   ;;  %s18_s21 = int_to_ptr.vmem [resolvable:$true] %s17_s21 }
   0x6   :  { %s353_s23 = smov 4   ;;  %s39_s1 = sshll.u32 %s399_s2, 4  ;;  %s40_s1 = int_to_ptr.hbm [resolvable:$true] %s39_s1 }
   0x7   :  { %23 = dma.hbm_to_vmem [thread:$0]  %s16_s19, 128, %s18_s21, [#allocation5], %s352_s22, %s352_s22, %s353_s23  }
   0x8   :  { %s354_s26 = smov [#allocation9]  }
   0x9   :  { %s41_s27 = sshll.u32 %s354_s26, 4  ;;  %s42_s27 = int_to_ptr.vmem [resolvable:$true] %s41_s27 }
   0xa   :  { %47 = dma.hbm_to_vmem [thread:$0]  %s40_s1, 256, %s42_s27, [#allocation8], %s352_s22, %s352_s22, %s353_s23  }
   0xb   :  { %344 = dma.done.wait [#allocation5], 128  }
   0xc   :  { %345 = vsyncadd [#allocation5], 4294967168 }
   0xd   :  { %346 = dma.done.wait [#allocation8], 288  }
   0xe   :  { %347 = vsyncadd [#allocation8], 4294967008  ;;  %v74_v0 = vlaneseq  ;;  %vm65_vm0 = vcmask 254976   ;;  %vm67_vm1 = vcmask 1024   ;;  %v355_v1 = vmov 0.0   ;;  %v223_v11 = vld [vmem:[#allocation9 + $0x8] sm:$0xff] }
   0xf   :  { %66 = vst.msk [vmem:[#allocation2] sm:$0x3] %vm65_vm0, %v355_v1  ;;  %v71_v3 = vld [vmem:[#allocation7] sm:$0x3]  ;;  %vm124_vm2 = vcmask 58368   ;;  %v356_v9 = vmov 0   ;;  %170 = vmatpush.bf16.msra.mxu0 %v223_v11 }
  0x10   :  { %v75_v2 = vshrl.u32 %v74_v0, 7  ;;  %68 = vst.msk [vmem:[#allocation3] sm:$0x3] %vm67_vm1, %v355_v1  ;;  %v72_v4 = vcvt.s32.f32 %v71_v3  ;;  %242 = vset.pattern.permute.xlu1 %v356_v9  ;;  %v225_v22 = vld [vmem:[#allocation4] sm:$0xff]   ;;  %vm100_vm3 = vcmask 261120   ;;  %vm117_vm4 = vcmask 1041409  }
  0x11   :  { %v226_v24 = vunpack.c.l.bf16 %v225_v22  ;;  %v227_v25 = vunpack.c.h.bf16 %v225_v22  ;;  %v222_v50 = vld [vmem:[#allocation9] sm:$0xff]  ;;  %vm178_vm5 = vcmask 1041408   ;;  %s357_s0 = smov [#allocation10]   ;;  %s202_s30 = sshll.u32 %s400_s3, 4  ;;  %s203_s30 = int_to_ptr.hbm [resolvable:$true] %s202_s30 }
  0x12   :  { %236 = vset.pattern.permute.xlu0 %v75_v2  ;;  %v125_v5 = vsel %vm124_vm2, %v72_v4, 0.0  ;;  %v73_v6 = vperm.slane %v72_v4, 0  ;;  %v80_v7 = vperm.slane %v72_v4, 1  ;;  %s200_s2 = sshll.u32 %s357_s0, 4  ;;  %s201_s2 = int_to_ptr.vmem [resolvable:$true] %s200_s2 }
  0x13   :  { %126 = vadd.xlane.f32.xlu0 %v125_v5  ;;  %171 = vmatpush.bf16.msra.mxu0 %v222_v50 }
  0x14   :  { %v237_v8 = vpack.i.bf16 %v80_v7, %v73_v6 }
  0x16   :  { %v97_v48 = vld [vmem:[#allocation2] sm:$0x3] }
  0x17   :  { %v123_v10 = vld [vmem:[#allocation3] sm:$0x3] }
  0x27   :  { %238 = vperm.xlu0 %236, %v237_v8  }
  0x2f   :  { %243 = vset.pattern.permute.xlu0 %v356_v9 }
  0x86   :  { %v127_v12 = vpop.xlane.xlu0 %126 }
  0x87   :  { %v128_v13 = vadd.f32 %v127_v12, %v123_v10 }
  0x89   :  { %130 = vst.msk [vmem:[#allocation3] sm:$0x3] %vm67_vm1, %v128_v13 }
  0x90   :  { %v134_v14 = vld [vmem:[#allocation3] sm:$0x3] }
  0x91   :  { %v135_v15 = vmax.f32 %v134_v14, 1e-09 }
  0x93   :  { %244 = vrcp.f32 %v135_v15 }
  0x99   :  { %v245_v16 = vpop.eup %244  ;;  %v239_v17 = vpop.permute.xlu0 %238 }
  0x9a   :  { %140 = vperm.xlu1 %242, %v245_v16   ;;  %v241_v18 = vunpack.i.h.bf16 %v239_v17  ;;  %v240_v19 = vunpack.i.l.bf16 %v239_v17 }
  0x9c   :  { %v88_v20 = vpack.c.bf16 %v241_v18, %v241_v18  ;;  %v87_v21 = vpack.c.bf16 %v240_v19, %v240_v19 }
  0x9e   :  { %v92_v23 = vunpack.c.l.bf16 %v88_v20  ;;  %v91_v26 = vunpack.c.l.bf16 %v87_v21 }
  0xa0   :  { %v93_v27 = vmul.f32 %v226_v24, %v91_v26  ;;  %v94_v28 = vmul.f32 %v227_v25, %v92_v23 }
  0xa2   :  { %v95_v29 = vpack.c.bf16 %v93_v27, %v93_v27  ;;  %v96_v30 = vpack.c.bf16 %v94_v28, %v94_v28 }
  0xa4   :  { %v98_v31 = vunpack.c.l.bf16 %v95_v29  ;;  %v99_v32 = vunpack.c.l.bf16 %v96_v30 }
  0xa6   :  { %v101_v33 = vsel %vm100_vm3, %v98_v31, 0.0  ;;  %v108_v34 = vsel %vm100_vm3, %v99_v32, 0.0 }
  0xa7   :  { %v102_v35 = vrot.slane %v101_v33, 4  ;;  %v109_v36 = vrot.slane %v108_v34, 4 }
  0xa9   :  { %v103_v37 = vadd.f32 %v102_v35, %v101_v33  ;;  %v110_v38 = vadd.f32 %v109_v36, %v108_v34 }
  0xab   :  { %v104_v39 = vrot.slane %v103_v37, 2  ;;  %v111_v40 = vrot.slane %v110_v38, 2 }
  0xad   :  { %v105_v41 = vadd.f32 %v104_v39, %v103_v37  ;;  %v112_v42 = vadd.f32 %v111_v40, %v110_v38 }
  0xaf   :  { %v106_v43 = vrot.slane %v105_v41, 1  ;;  %v113_v44 = vrot.slane %v112_v42, 1 }
  0xb1   :  { %v107_v45 = vadd.f32 %v106_v43, %v105_v41  ;;  %v114_v46 = vadd.f32 %v113_v44, %v112_v42 }
  0xb3   :  { %v118_v47 = vsel %vm117_vm4, %v114_v46, %v107_v45 }
  0xb4   :  { %v120_v49 = vadd.f32 %v118_v47, %v97_v48 }
  0xb6   :  { %122 = vst.msk [vmem:[#allocation2] sm:$0x3] %vm65_vm0, %v120_v49 }
  0xbd   :  { %v136_v52 = vld [vmem:[#allocation2] sm:$0x3] }
 0x10c   :  { %v141_v51 = vpop.permute.xlu1 %140 }
 0x10d   :  { %v143_v53 = vmul.f32 %v141_v51, %v136_v52 }
 0x10f   :  { %v144_v54 = vpack.c.bf16 %v143_v53, %v143_v53 }
 0x111   :  { %221 = vmatmul.msk.bf16.vlgmr.msra.gmra.mxu0 %vm100_vm3, %v144_v54 }
 0x18e   :  { %v173_v55 = vpop.f32.mrf.mxu0 }
 0x18f   :  { %v177_v56 = vmul.f32 %v173_v55, %v173_v55 }
 0x191   :  { %v179_v57 = vsel %vm178_vm5, %v177_v56, 0.0 }
 0x192   :  { %180 = vadd.xlane.f32.xlu1 %v179_v57 }
 0x196   :  { %v175_v58 = vpop.f32.mrf.mxu0 }
 0x205   :  { %v181_v59 = vpop.xlane.xlu1 %180 }
 0x206   :  { %v182_v60 = vmax.f32 %v181_v59, 1e-24 }
 0x208   :  { %246 = vrsqrt.f32 %v182_v60  ;;  %vm189_vm7 = vweird.f32 %v182_v60 }
 0x20e   :  { %v247_v61 = vpop.eup %246 }
 0x20f   :  { %v184_v62 = vmul.f32 %v247_v61, %v182_v60  ;;  %vm190_vm6 = vweird.f32 %v247_v61 }
 0x210   :  { %vm191_vm8 = vmor %vm189_vm7, %vm190_vm6 }
 0x211   :  { %v185_v63 = vmul.f32 %v247_v61, %v184_v62 }
 0x213   :  { %v186_v0 = vmul.f32 0.5, %v185_v63 }
 0x215   :  { %v187_v1 = vsub.f32 1.5, %v186_v0 }
 0x217   :  { %v188_v2 = vmul.f32 %v247_v61, %v187_v1 }
 0x219   :  { %v192_v3 = vsel %vm191_vm8, %v247_v61, %v188_v2 }
 0x21a   :  { %v193_v4 = vmul.f32 %v192_v3, %v173_v55 }
 0x21c   :  { %194 = vst [vmem:[#allocation10] sm:$0x3] %v193_v4 }
 0x21d   :  { %205 = dma.vmem_to_hbm [thread:$0]  %s201_s2, 32, %s203_s30, [#allocation6]  }
 0x21e   :  { %348 = dma.done.wait [#allocation6], 32  }
 0x21f   :  { %349 = vsyncadd [#allocation6], 4294967264 }
 0x220   :  { %210 = vsyncpa [#allocation5], 1 }
 0x221   :  { %211 = vsyncpa [#allocation8], 1 }
 0x222   :  { %212 = vsyncpa [#allocation6], 1 }

</bundles_post_ra>
